<compile_context>
chip_gen: v7x
topology: tpu7x:2x2x1
jax: 0.10.0
libtpu: 0.0.40
codegen_flags: <defaults>
</compile_context>

<pallas_src>
import jax
import jax.numpy as jnp
from jax.experimental import pallas as pl
from jax.experimental.pallas import tpu as pltpu

_LANE = 128


def _vdn_sum_kernel(q_ref, o_ref):
    # q_ref: (n_agents, TL) tile; o_ref: (1, TL) tile.
    # Single streaming pass: read each input element once, reduce the (small)
    # agent axis in f32 on the VPU, write each output element once.
    q = q_ref[...]
    s = jnp.sum(q.astype(jnp.float32), axis=0, keepdims=True)
    o_ref[...] = s.astype(o_ref.dtype)


def _choose_tile(L, n_agents, itemsize):
    """Pick the lane-tile size TL and number of grid tiles."""
    # Target ~512 x 128 elements per agent per tile; cap the input block at
    # ~4 MiB so double-buffering fits the smallest scoped-VMEM default (v5e).
    target = 512 * _LANE
    cap = (4 * 1024 * 1024) // max(1, n_agents * itemsize)
    cap = max(_LANE, (cap // _LANE) * _LANE)
    tl = min(target, cap)
    if L <= tl:
        return L, 1  # single full-extent block (always layout-legal)
    # tl is a multiple of 128; Pallas masks the ragged boundary block, and the
    # reduction is elementwise across lanes, so padding lanes are harmless.
    return tl, pl.cdiv(L, tl)


def vdn_sum(q_values: jax.Array) -> jax.Array:
    """torch.sum(q_values, dim=0, keepdim=True) as a Pallas TPU kernel."""
    n_agents, batch, n_actions = q_values.shape
    # Flatten (batch, n_actions) -> L so the trailing (lane) dim is large and
    # lane-dense regardless of n_actions.
    L = batch * n_actions
    q2 = q_values.reshape(n_agents, L)
    tl, n_tiles = _choose_tile(L, n_agents, q2.dtype.itemsize)

    out2 = pl.pallas_call(
        _vdn_sum_kernel,
        out_shape=jax.ShapeDtypeStruct((1, L), q_values.dtype),
        grid=(n_tiles,),
        in_specs=[pl.BlockSpec((n_agents, tl), lambda i: (0, i))],
        out_specs=pl.BlockSpec((1, tl), lambda i: (0, i)),
        compiler_params=pltpu.CompilerParams(
            # Tiles are independent -> parallel, so v7x's two TensorCores
            # share the work; no-op on single-TC v5e/v6e.
            dimension_semantics=("parallel",),
        ),
    )(q2)
    return out2.reshape(1, batch, n_actions)


if __name__ == "__main__":
    key = jax.random.PRNGKey(0)

    # Small, TPU-friendly case: 4 agents, batch 8, 128 actions (f32).
    n_agents, batch, n_actions = 4, 8, 128
    q_values = jax.random.normal(key, (n_agents, batch, n_actions), dtype=jnp.float32)
    out = jax.block_until_ready(vdn_sum(q_values))
    ref = jnp.sum(q_values, axis=0, keepdims=True)
    assert out.shape == (1, batch, n_actions), out.shape
    assert out.dtype == q_values.dtype, out.dtype
    assert jnp.allclose(out, ref, atol=1e-5, rtol=1e-5), "mismatch vs reference (f32)"

    # Realistic RL shape with a sub-128 action count; exercises the
    # flatten-for-lane-density path (trailing dim becomes batch*n_actions).
    q_small_act = jax.random.normal(key, (5, 300, 18), dtype=jnp.float32)
    out2 = jax.block_until_ready(vdn_sum(q_small_act))
    ref2 = jnp.sum(q_small_act, axis=0, keepdims=True)
    assert jnp.allclose(out2, ref2, atol=1e-5, rtol=1e-5), "mismatch vs reference (n_actions=18)"

    # bf16 input: kernel accumulates in f32 and casts back on store.
    q_bf16 = q_values.astype(jnp.bfloat16)
    out3 = jax.block_until_ready(vdn_sum(q_bf16))
    ref3 = jnp.sum(q_bf16.astype(jnp.float32), axis=0, keepdims=True).astype(jnp.bfloat16)
    assert out3.dtype == jnp.bfloat16
    assert jnp.allclose(out3.astype(jnp.float32), ref3.astype(jnp.float32),
                        atol=5e-2, rtol=5e-2), "mismatch vs reference (bf16)"

    print("KERNEL_OK")
</pallas_src>

<mosaic_0001>
module attributes {stable_mosaic.version = 11 : i64} {
  func.func @_vdn_sum_kernel(%arg0: i32, %arg1: memref<4x1024xf32, #tpu.memory_space<vmem>>, %arg2: memref<1x1024xf32, #tpu.memory_space<vmem>>) attributes {dimension_semantics = [#tpu.dimension_semantics<parallel>], iteration_bounds = array<i64: 1>, scalar_prefetch = 0 : i64, scratch_operands = 0 : i64, tpu.core_type = #tpu.core_type<tc>, window_params = [{transform_indices = @transform_0, window_bounds = array<i64: 4, 1024>}, {transform_indices = @transform_1, window_bounds = array<i64: 1, 1024>}]} {
    %c0 = arith.constant 0 : index
    %c0_0 = arith.constant 0 : index
    %0 = vector.load %arg1[%c0, %c0_0] : memref<4x1024xf32, #tpu.memory_space<vmem>>, vector<4x1024xf32>
    %cst = arith.constant dense<0.000000e+00> : vector<1024xf32>
    %1 = vector.multi_reduction <add>, %0, %cst [0] : vector<4x1024xf32> to vector<1024xf32>
    %2 = vector.shape_cast %1 : vector<1024xf32> to vector<1x1024xf32>
    %c0_1 = arith.constant 0 : index
    %c0_2 = arith.constant 0 : index
    %3 = vector.load %arg2[%c0_1, %c0_2] : memref<1x1024xf32, #tpu.memory_space<vmem>>, vector<1x1024xf32>
    tpu.vector_store %arg2[%c0_1, %c0_2], %2 {strides = array<i32>} : memref<1x1024xf32, #tpu.memory_space<vmem>>, vector<1x1024xf32>,
    return
  }
  func.func @transform_0(%arg0: i32) -> (i32, i32) {
    %c0_i32 = arith.constant 0 : i32
    %c0_i32_0 = arith.constant 0 : i32
    return %c0_i32, %arg0 : i32, i32
  }
  func.func @transform_1(%arg0: i32) -> (i32, i32) {
    %c0_i32 = arith.constant 0 : i32
    %c0_i32_0 = arith.constant 0 : i32
    return %c0_i32, %arg0 : i32, i32
  }
}

</mosaic_0001>

<bundles_post_ra>
// kernel: tpu_custom_call.1
= control target key start
LH: loop header
LB: loop body
LE: loop exit
PB: predicated region body
PF: predicated region fallthrough
CT: control target
= control target key end

     0   :  { %6 = vsyncpa [#allocation3], 0  ;;  %s271_s0 = inlined_call_operand.hbm [shape: f32[4,1024], index: 0, kind: input, shape index: {}]   ;;  %s272_s1 = inlined_call_operand.hbm [shape: f32[1,1024], index: 1, kind: output, shape index: {}]  }
   0x1   :  { %7 = vsyncpa [#allocation4], 0  ;;  %s223_s6 = smov [#allocation2]   ;;  %s175_s10 = scalar_lea.hbm %s271_s0, 512 }
   0x2   :  { %s14_s7 = sshll.u32 %s223_s6, 4  ;;  %p176_p0 = scmp.ne.s32.totalorder %s271_s0, %s175_s10  ;;  %s15_s7 = int_to_ptr.vmem [resolvable:$true] %s14_s7 }
   0x3   :  { %p179_p1 = scmp.lt.u32.totalorder %s175_s10, %s271_s0 }
   0x5   :  { %p181_p2 = pnand %p179_p1, %p176_p0 }
   0x7   :  { %184 = shalt.err (!%p181_p2)
}
   0x8   :  { %s185_s15 = scalar_lea.vmem %s15_s7, 512  ;;  %p190_p4 = scmp.lt.s32.totalorder %s15_s7, %s15_s7 }
   0x9   :  { %p186_p3 = scmp.ne.s32.totalorder %s15_s7, %s185_s15  ;;  %p191_p5 = scmp.lt.s32.totalorder %s185_s15, %s185_s15 }
   0xb   :  { %p192_p6 = por %p191_p5, %p190_p4 }
   0xd   :  { %p193_p7 = pnand %p192_p6, %p186_p3 }
   0xf   :  { %196 = shalt.err (!%p193_p7)
}
  0x10   :  { %17 = dma.hbm_to_vmem [thread:$0]  %s271_s0, 512, %s15_s7, [#allocation3]  }
  0x11   :  { %219 = dma.done.wait [#allocation3], 512  }
  0x12   :  { %220 = vsyncadd [#allocation3], 4294966784  ;;  %v224_v0 = vmov 1966171168   ;;  %v109_v2 = vlaneseq  ;;  %vm37_vm0 = vcmask 1043456   ;;  %v21_v3 = vld [vmem:[#allocation2] sm:$0xff] }
  0x13   :  { %v248_v1 = vunpack.c.l.s4 %v224_v0  ;;  %v22_v4 = vld [vmem:[#allocation2 + $0x8] sm:$0xff]  ;;  %v23_v5 = vld [vmem:[#allocation2 + $0x10] sm:$0xff]  ;;  %v24_v8 = vld [vmem:[#allocation2 + $0x18] sm:$0xff]  ;;  %v29_v9 = vcombine.high %v21_v3, %v21_v3  ;;  %v38_v12 = vsel %vm37_vm0, %v21_v3, 0.0  ;;  %s225_s0 = smov [#allocation5]  }
  0x14   :  { %v110_v7 = vshrl.u32 %v109_v2, 7  ;;  %v30_v10 = vcombine.high %v22_v4, %v22_v4  ;;  %v31_v11 = vcombine.high %v23_v5, %v23_v5  ;;  %v32_v13 = vcombine.high %v24_v8, %v24_v8  ;;  %s159_s18 = sshll.u32 %s225_s0, 4  ;;  %s160_s18 = int_to_ptr.vmem [resolvable:$true] %s159_s18 }
  0x15   :  { %v108_v6 = vunpack.c.0.s8 %v248_v1  ;;  %v39_v14 = vrot.slane %v38_v12, 4  ;;  %v52_v15 = vsel %vm37_vm0, %v22_v4, 0.0  ;;  %v66_v16 = vsel %vm37_vm0, %v23_v5, 0.0  ;;  %s197_s19 = scalar_lea.vmem %s160_s18, 128  ;;  %p202_p9 = scmp.lt.s32.totalorder %s160_s18, %s160_s18 }
  0x16   :  { %v45_v17 = vsel %vm37_vm0, %v29_v9, 0.0  ;;  %v53_v18 = vrot.slane %v52_v15, 4  ;;  %v59_v19 = vsel %vm37_vm0, %v30_v10, 0.0  ;;  %v67_v20 = vrot.slane %v66_v16, 4  ;;  %p198_p8 = scmp.ne.s32.totalorder %s160_s18, %s197_s19  ;;  %p203_p10 = scmp.lt.s32.totalorder %s197_s19, %s197_s19 }
  0x17   :  { %v40_v21 = vadd.f32 %v39_v14, %v38_v12  ;;  %v46_v22 = vrot.slane %v45_v17, 4  ;;  %v60_v23 = vrot.slane %v59_v19, 4  ;;  %v73_v24 = vsel %vm37_vm0, %v31_v11, 0.0 }
  0x18   :  { %v54_v25 = vadd.f32 %v53_v18, %v52_v15  ;;  %v68_v26 = vadd.f32 %v67_v20, %v66_v16  ;;  %v74_v27 = vrot.slane %v73_v24, 4  ;;  %v80_v28 = vsel %vm37_vm0, %v24_v8, 0.0  ;;  %p204_p11 = por %p203_p10, %p202_p9 }
  0x19   :  { %v41_v29 = vrot.slane %v40_v21, 2  ;;  %v47_v30 = vadd.f32 %v46_v22, %v45_v17  ;;  %v61_v31 = vadd.f32 %v60_v23, %v59_v19  ;;  %v81_v32 = vrot.slane %v80_v28, 4 }
  0x1a   :  { %v55_v33 = vrot.slane %v54_v25, 2  ;;  %v69_v34 = vrot.slane %v68_v26, 2  ;;  %v75_v35 = vadd.f32 %v74_v27, %v73_v24  ;;  %v87_v36 = vsel %vm37_vm0, %v32_v13, 0.0  ;;  %p205_p12 = pnand %p204_p11, %p198_p8 }
  0x1b   :  { %v42_v37 = vadd.f32 %v41_v29, %v40_v21  ;;  %v48_v38 = vrot.slane %v47_v30, 2  ;;  %v62_v39 = vrot.slane %v61_v31, 2  ;;  %v82_v40 = vadd.f32 %v81_v32, %v80_v28 }
  0x1c   :  { %v56_v41 = vadd.f32 %v55_v33, %v54_v25  ;;  %v70_v42 = vadd.f32 %v69_v34, %v68_v26  ;;  %v76_v43 = vrot.slane %v75_v35, 2  ;;  %v88_v44 = vrot.slane %v87_v36, 4 }
  0x1d   :  { %v43_v45 = vrot.slane %v42_v37, 1  ;;  %v49_v46 = vadd.f32 %v48_v38, %v47_v30  ;;  %v63_v47 = vadd.f32 %v62_v39, %v61_v31  ;;  %v83_v48 = vrot.slane %v82_v40, 2 }
  0x1e   :  { %v57_v49 = vrot.slane %v56_v41, 1  ;;  %v71_v50 = vrot.slane %v70_v42, 1  ;;  %v77_v51 = vadd.f32 %v76_v43, %v75_v35  ;;  %v89_v52 = vadd.f32 %v88_v44, %v87_v36 }
  0x1f   :  { %v44_v53 = vadd.f32 %v43_v45, %v42_v37  ;;  %v50_v54 = vrot.slane %v49_v46, 1  ;;  %v64_v55 = vrot.slane %v63_v47, 1  ;;  %v84_v56 = vadd.f32 %v83_v48, %v82_v40 }
  0x20   :  { %v58_v57 = vadd.f32 %v57_v49, %v56_v41  ;;  %v72_v58 = vadd.f32 %v71_v50, %v70_v42  ;;  %v78_v59 = vrot.slane %v77_v51, 1  ;;  %v90_v60 = vrot.slane %v89_v52, 2 }
  0x21   :  { %v51_v61 = vadd.f32 %v50_v54, %v49_v46  ;;  %v65_v62 = vadd.f32 %v64_v55, %v63_v47  ;;  %v85_v63 = vrot.slane %v84_v56, 1  ;;  %v111_v0 = vsub.s32 %v108_v6, %v110_v7 }
  0x22   :  { %v79_v1 = vadd.f32 %v78_v59, %v77_v51  ;;  %v91_v2 = vadd.f32 %v90_v60, %v89_v52 }
  0x23   :  { %v102_v3 = vcombine.low %v44_v53, %v51_v61  ;;  %v103_v4 = vcombine.low %v58_v57, %v65_v62  ;;  %v86_v5 = vadd.f32 %v85_v63, %v84_v56 }
  0x24   :  { %v92_v8 = vrot.slane %v91_v2, 1  ;;  %v104_v9 = vcombine.low %v72_v58, %v79_v1 }
  0x25   :  { %v112_v10 = vrot.slane %v102_v3, %v111_v0  ;;  %v119_v11 = vrot.slane %v103_v4, %v111_v0 }
  0x26   :  { %v93_v12 = vadd.f32 %v92_v8, %v91_v2  ;;  %v126_v14 = vrot.slane %v104_v9, %v111_v0 }
  0x27   :  { %v134_v15 = vcombine.low %v112_v10, %v119_v11 }
  0x28   :  { %v105_v13 = vcombine.low %v86_v5, %v93_v12 }
  0x29   :  { %v142_v18 = vrot.slane %v134_v15, %v111_v0 }
  0x2a   :  { %v133_v16 = vrot.slane %v105_v13, %v111_v0 }
  0x2c   :  { %v135_v17 = vcombine.low %v126_v14, %v133_v16 }
  0x2e   :  { %v149_v19 = vrot.slane %v135_v17, %v111_v0 }
  0x30   :  { %v150_v6 = vcombine.low %v142_v18, %v149_v19 }
  0x32   :  { %152 = vst [vmem:[#allocation5] sm:$0xff] %v150_v6 }
  0x33   :  { %208 = shalt.err (!%p205_p12)
}
  0x34   :  { %s209_s22 = scalar_lea.hbm %s272_s1, 128 }
  0x35   :  { %p210_p13 = scmp.ne.s32.totalorder %s272_s1, %s209_s22  ;;  %p213_p0 = scmp.lt.u32.totalorder %s209_s22, %s272_s1 }
  0x37   :  { %p215_p1 = pnand %p213_p0, %p210_p13 }
  0x39   :  { %218 = shalt.err (!%p215_p1)
}
  0x3a   :  { %162 = dma.vmem_to_hbm [thread:$0]  %s160_s18, 128, %s272_s1, [#allocation4]  }
  0x3b   :  { %221 = dma.done.wait [#allocation4], 128  }
  0x3c   :  { %222 = vsyncadd [#allocation4], 4294967168 }
  0x3d   :  { %166 = vsyncpa [#allocation3], 1 }
  0x3e   :  { %167 = vsyncpa [#allocation4], 1 }

</bundles_post_ra>
